<compile_context>
chip_gen: v7x
topology: tpu7x:2x2x1
jax: 0.10.0
libtpu: 0.0.40
codegen_flags: <defaults>
</compile_context>

<pallas_src>
import functools

import jax
import jax.numpy as jnp
from jax import lax
from jax.experimental import pallas as pl
from jax.experimental.pallas import tpu as pltpu


_TARGET_STEP_BYTES = 8 << 20   # ~8 MiB HBM traffic per grid step (amortizes the
                               # ~0.35 us per-step overhead even at v7x HBM BW)
_VMEM_BLOCK_CAP = 40 << 20     # hard cap on double-buffered in+out block bytes
_VREG_BUDGET_ROWS = 384        # 48 vregs * 8 sublanes: (cout+1)*chunk <= this


def _cdiv(a, b):
    return -(-a // b)


def _sublane_align(dtype):
    # 8 for f32, 16 for bf16, 32 for int8 — keeps blocks sublane-aligned.
    return max(8, 32 // jnp.dtype(dtype).itemsize)


def _vmem_budget_bytes():
    """VMEM available for the double-buffered in+out blocks (with headroom)."""
    try:
        phys = pltpu.get_tpu_info().vmem_capacity_bytes  # 64 MiB v7x, 128 MiB v5e/v6e
    except Exception:  # trace-time query; fall back to the smallest generation
        phys = 64 << 20
    return min(_VMEM_BLOCK_CAP, int(phys * 5 // 8))


def _chunk_rows(cout, align, extent):
    """Rows per inner-loop step: bounds (cout+1)*chunk/8 acc+operand vregs to ~48."""
    chunk = max(align, (_VREG_BUDGET_ROWS // (cout + 1)) // align * align)
    return min(chunk, extent)


def _choose_tiling_rows(s8, cin, cout, itemsize, align, batch):
    """Fast path: spatial viewed as (s8, 128). Pick ts8 rows/block + inner chunk."""
    row_bytes = (cin + cout) * 128 * itemsize            # in+out HBM bytes per row
    ts8_max = min(_vmem_budget_bytes() // (2 * row_bytes),   # double-buffered blocks
                  _TARGET_STEP_BYTES // row_bytes)
    ts8_max = max(align, ts8_max - ts8_max % align)

    if s8 <= ts8_max:
        ts8 = s8                                          # full-dim escape block
    else:
        ts8 = None
        for t in range(ts8_max, 0, -align):               # prefer an exact divisor
            if s8 % t == 0:
                ts8 = t
                break
        if ts8 is None:
            ts8 = ts8_max                                 # last block partial (masked)

    # v7x megacore: keep >= 2 "parallel" grid steps when the shape allows it.
    if batch * _cdiv(s8, ts8) < 2 and s8 >= 2 * align:
        ts8 = max(align, (s8 // 2) // align * align)

    return ts8, _chunk_rows(cout, align, ts8)


def _choose_tiling_flat(s, cin, cout, itemsize, batch):
    """Ragged spatial (s % 128 != 0): flat (N, C, S) layout, lane-dim tiles."""
    col_bytes = (cin + cout) * itemsize
    budget = _vmem_budget_bytes()
    fits = 2 * s * col_bytes <= budget
    if s < 128 or (fits and (batch >= 2 or s < 256)):
        # Single full-dim block along the lane axis (no edge masking needed).
        return s, min(s, 8 * 128)
    ts = min(budget // (2 * col_bytes), _TARGET_STEP_BYTES // col_bytes)
    ts = max(128, ts - ts % 128)
    ts = min(ts, (s // 128) * 128)        # block dim must not exceed the array dim
    if batch * _cdiv(s, ts) < 2:
        ts = max(128, (s // 2) // 128 * 128)
    # Ragged tail of the final block is handled by Pallas edge-block masking.
    return ts, min(ts, 8 * 128)


def _passthru_kernel(x_ref, w_ref, b_ref, o_ref, *, start, cin, cout, chunk):
    """out[o] = b[o] + x[start+o] + sum_c w[c,o] * x[c]  (per spatial element).

    x_ref: (1, cin, TS8, 128) or (1, cin, TS) VMEM block (spatial on lanes).
    w_ref: (cin*cout,) SMEM f32 scalars (row-major 1x1-conv weight).
    b_ref: (cout,)     SMEM f32 scalars.
    o_ref: matching (1, cout, ...) VMEM block.
    """
    four_d = len(x_ref.shape) == 4
    extent = x_ref.shape[2]

    # Hoist SMEM scalar reads; fold the residual slice into the conv coefficient
    # (c == start + o gets w + 1) so the residual channel is not loaded twice.
    coef = [[w_ref[c * cout + o] + (1.0 if c == start + o else 0.0)
             for o in range(cout)] for c in range(cin)]
    bias = [b_ref[o] for o in range(cout)]

    def load(c, sl):
        v = x_ref[0, c, sl, :] if four_d else x_ref[0, c, sl]
        return v.astype(jnp.float32)

    def store(o, sl, v):
        if four_d:
            o_ref[0, o, sl, :] = v.astype(o_ref.dtype)
        else:
            o_ref[0, o, sl] = v.astype(o_ref.dtype)

    def do_chunk(off, size):
        sl = pl.ds(off, size)
        accs = [None] * cout
        # TODO(synk): for large cin*cout (>~64x64) this VPU scaled-add form
        # becomes VALU-bound; switch to a channels-on-lanes jnp.dot (MXU) there.
        for c in range(cin):                 # each input chunk loaded exactly once
            xc = load(c, sl)
            for o in range(cout):            # ... reused for every output channel
                t = coef[c][o] * xc
                accs[o] = (t + bias[o]) if accs[o] is None else (accs[o] + t)
        for o in range(cout):
            store(o, sl, accs[o])

    n_full, rem = divmod(extent, chunk)
    if n_full == 1:
        do_chunk(0, chunk)
    elif n_full > 1:
        def body(r, carry):                  # short fixed trip count: unroll for LLO
            do_chunk(pl.multiple_of(r * chunk, chunk), chunk)
            return carry
        lax.fori_loop(0, n_full, body, None, unroll=min(n_full, 8))
    if rem:
        do_chunk(n_full * chunk, rem)


def passthru_forward(x_nchw, w, b, start, end):
    """x_nchw: (N, C, H, W); w: (Cin, Cout) 1x1-conv weight; b: (Cout,)."""
    n, c, h, wd = x_nchw.shape
    cin, cout = c, w.shape[1]
    assert cout == end - start, "inner module output channels must match slice width"
    assert 0 <= start and end <= c

    spatial = h * wd
    itemsize = jnp.dtype(x_nchw.dtype).itemsize
    align = _sublane_align(x_nchw.dtype)

    # Tiny 1x1-conv weight + bias live in SMEM as flat f32 scalars.
    w_flat = w.astype(jnp.float32).reshape(cin * cout)
    b_flat = b.astype(jnp.float32).reshape(cout)

    if spatial % 128 == 0:
        # Fast path: free contiguous reshape puts spatial on sublanes + lanes.
        s8 = spatial // 128
        ts8, chunk = _choose_tiling_rows(s8, cin, cout, itemsize, align, n)
        x_in = x_nchw.reshape(n, cin, s8, 128)
        grid = (n, _cdiv(s8, ts8))
        in_spec = pl.BlockSpec((1, cin, ts8, 128), lambda i, j: (i, 0, j, 0))
        out_spec = pl.BlockSpec((1, cout, ts8, 128), lambda i, j: (i, 0, j, 0))
        out_shape = jax.ShapeDtypeStruct((n, cout, s8, 128), x_nchw.dtype)
        block_elems = ts8 * 128
    else:
        # Ragged spatial: flat (N, C, S) layout — no wrapper pad / output slice
        # (which would cost extra full-tensor HBM round trips).
        ts, chunk = _choose_tiling_flat(spatial, cin, cout, itemsize, n)
        x_in = x_nchw.reshape(n, cin, spatial)
        grid = (n, _cdiv(spatial, ts))
        in_spec = pl.BlockSpec((1, cin, ts), lambda i, j: (i, 0, j))
        out_spec = pl.BlockSpec((1, cout, ts), lambda i, j: (i, 0, j))
        out_shape = jax.ShapeDtypeStruct((n, cout, spatial), x_nchw.dtype)
        block_elems = ts

    # Explicit VMEM budget: double-buffered in+out blocks + slack.
    vmem_need = 2 * (cin + cout) * block_elems * itemsize
    vmem_limit = int(min(max(32 << 20, vmem_need + (4 << 20)), 60 << 20))

    kernel = functools.partial(_passthru_kernel, start=start, cin=cin,
                               cout=cout, chunk=chunk)
    out = pl.pallas_call(
        kernel,
        out_shape=out_shape,
        grid=grid,
        in_specs=[in_spec,
                  pl.BlockSpec(memory_space=pltpu.MemorySpace.SMEM),
                  pl.BlockSpec(memory_space=pltpu.MemorySpace.SMEM)],
        out_specs=out_spec,
        compiler_params=pltpu.CompilerParams(
            dimension_semantics=("parallel", "parallel"),
            vmem_limit_bytes=vmem_limit),
    )(x_in, w_flat, b_flat)

    # Free contiguous reshape back to NCHW — no transposes anywhere.
    return out.reshape(n, cout, h, wd)


def reference_forward(x_nchw, w, b, start, end):
    """Pure-JAX reference matching PyTorch semantics (1x1 conv + slice add)."""
    conv = jnp.einsum("nchw,co->nohw", x_nchw, w,
                      precision=lax.Precision.HIGHEST) + b[None, :, None, None]
    return conv + x_nchw[:, start:end]


if __name__ == "__main__":
    key = jax.random.PRNGKey(0)
    k_x, k_w, k_b = jax.random.split(key, 3)

    # Primary demo shape consistent with the module: NCHW input, slice [1:3].
    N, C, H, W = 2, 4, 16, 16
    START, END = 1, 3
    COUT = END - START

    x = jax.random.normal(k_x, (N, C, H, W), dtype=jnp.float32)
    w = jax.random.normal(k_w, (C, COUT), dtype=jnp.float32) * 0.1
    b = jax.random.normal(k_b, (COUT,), dtype=jnp.float32) * 0.1

    out = jax.block_until_ready(passthru_forward(x, w, b, START, END))
    ref = reference_forward(x, w, b, START, END)
    assert out.shape == (N, COUT, H, W)
    assert jnp.allclose(out, ref, atol=1e-5, rtol=1e-5), "mismatch vs reference"

    # Extra small checks: (a) tiled fast path exercising the megacore split and
    # the unrolled chunk loop, (b) ragged (<128) spatial via the flat path.
    for shape in ((1, 4, 256, 256), (2, 4, 10, 10)):
        xs = jax.random.normal(k_x, shape, dtype=jnp.float32)
        o2 = jax.block_until_ready(passthru_forward(xs, w, b, START, END))
        r2 = reference_forward(xs, w, b, START, END)
        assert jnp.allclose(o2, r2, atol=1e-5, rtol=1e-5), f"mismatch at {shape}"

    print("KERNEL_OK")
</pallas_src>

<mosaic_0001>
module attributes {stable_mosaic.version = 11 : i64} {
  func.func @_passthru_kernel(%arg0: i32, %arg1: i32, %arg2: memref<1x4x2x128xf32, #tpu.memory_space<vmem>>, %arg3: memref<8xf32, #tpu.memory_space<smem>>, %arg4: memref<2xf32, #tpu.memory_space<smem>>, %arg5: memref<1x2x2x128xf32, #tpu.memory_space<vmem>>) attributes {dimension_semantics = [#tpu.dimension_semantics<parallel>, #tpu.dimension_semantics<parallel>], iteration_bounds = array<i64: 2, 1>, scalar_prefetch = 0 : i64, scratch_operands = 0 : i64, tpu.core_type = #tpu.core_type<tc>, window_params = [{transform_indices = @transform_0, window_bounds = array<i64: 1, 4, 2, 128>}, {transform_indices = @transform_1, window_bounds = array<i64: 8>}, {transform_indices = @transform_2, window_bounds = array<i64: 2>}, {transform_indices = @transform_3, window_bounds = array<i64: 1, 2, 2, 128>}]} {
    %c0 = arith.constant 0 : index
    %0 = memref.load %arg3[%c0] : memref<8xf32, #tpu.memory_space<smem>>
    %cst = arith.constant 0.000000e+00 : f32
    %1 = arith.addf %0, %cst : f32
    %c1 = arith.constant 1 : index
    %2 = memref.load %arg3[%c1] : memref<8xf32, #tpu.memory_space<smem>>
    %cst_0 = arith.constant 0.000000e+00 : f32
    %3 = arith.addf %2, %cst_0 : f32
    %c2 = arith.constant 2 : index
    %4 = memref.load %arg3[%c2] : memref<8xf32, #tpu.memory_space<smem>>
    %cst_1 = arith.constant 1.000000e+00 : f32
    %5 = arith.addf %4, %cst_1 : f32
    %c3 = arith.constant 3 : index
    %6 = memref.load %arg3[%c3] : memref<8xf32, #tpu.memory_space<smem>>
    %cst_2 = arith.constant 0.000000e+00 : f32
    %7 = arith.addf %6, %cst_2 : f32
    %c4 = arith.constant 4 : index
    %8 = memref.load %arg3[%c4] : memref<8xf32, #tpu.memory_space<smem>>
    %cst_3 = arith.constant 0.000000e+00 : f32
    %9 = arith.addf %8, %cst_3 : f32
    %c5 = arith.constant 5 : index
    %10 = memref.load %arg3[%c5] : memref<8xf32, #tpu.memory_space<smem>>
    %cst_4 = arith.constant 1.000000e+00 : f32
    %11 = arith.addf %10, %cst_4 : f32
    %c6 = arith.constant 6 : index
    %12 = memref.load %arg3[%c6] : memref<8xf32, #tpu.memory_space<smem>>
    %cst_5 = arith.constant 0.000000e+00 : f32
    %13 = arith.addf %12, %cst_5 : f32
    %c7 = arith.constant 7 : index
    %14 = memref.load %arg3[%c7] : memref<8xf32, #tpu.memory_space<smem>>
    %cst_6 = arith.constant 0.000000e+00 : f32
    %15 = arith.addf %14, %cst_6 : f32
    %c0_7 = arith.constant 0 : index
    %16 = memref.load %arg4[%c0_7] : memref<2xf32, #tpu.memory_space<smem>>
    %c1_8 = arith.constant 1 : index
    %17 = memref.load %arg4[%c1_8] : memref<2xf32, #tpu.memory_space<smem>>
    %c0_9 = arith.constant 0 : index
    %c0_10 = arith.constant 0 : index
    %c0_11 = arith.constant 0 : index
    %c0_12 = arith.constant 0 : index
    %18 = vector.load %arg2[%c0_9, %c0_10, %c0_11, %c0_12] : memref<1x4x2x128xf32, #tpu.memory_space<vmem>>, vector<1x1x2x128xf32>
    %19 = vector.shape_cast %18 : vector<1x1x2x128xf32> to vector<2x128xf32>
    %20 = vector.broadcast %1 : f32 to vector<2x128xf32>
    %21 = arith.mulf %20, %19 : vector<2x128xf32>
    %22 = vector.broadcast %16 : f32 to vector<2x128xf32>
    %23 = arith.addf %21, %22 : vector<2x128xf32>
    %24 = vector.broadcast %3 : f32 to vector<2x128xf32>
    %25 = arith.mulf %24, %19 : vector<2x128xf32>
    %26 = vector.broadcast %17 : f32 to vector<2x128xf32>
    %27 = arith.addf %25, %26 : vector<2x128xf32>
    %c0_13 = arith.constant 0 : index
    %c1_14 = arith.constant 1 : index
    %c0_15 = arith.constant 0 : index
    %c0_16 = arith.constant 0 : index
    %28 = vector.load %arg2[%c0_13, %c1_14, %c0_15, %c0_16] : memref<1x4x2x128xf32, #tpu.memory_space<vmem>>, vector<1x1x2x128xf32>
    %29 = vector.shape_cast %28 : vector<1x1x2x128xf32> to vector<2x128xf32>
    %30 = vector.broadcast %5 : f32 to vector<2x128xf32>
    %31 = arith.mulf %30, %29 : vector<2x128xf32>
    %32 = arith.addf %23, %31 : vector<2x128xf32>
    %33 = vector.broadcast %7 : f32 to vector<2x128xf32>
    %34 = arith.mulf %33, %29 : vector<2x128xf32>
    %35 = arith.addf %27, %34 : vector<2x128xf32>
    %c0_17 = arith.constant 0 : index
    %c2_18 = arith.constant 2 : index
    %c0_19 = arith.constant 0 : index
    %c0_20 = arith.constant 0 : index
    %36 = vector.load %arg2[%c0_17, %c2_18, %c0_19, %c0_20] : memref<1x4x2x128xf32, #tpu.memory_space<vmem>>, vector<1x1x2x128xf32>
    %37 = vector.shape_cast %36 : vector<1x1x2x128xf32> to vector<2x128xf32>
    %38 = vector.broadcast %9 : f32 to vector<2x128xf32>
    %39 = arith.mulf %38, %37 : vector<2x128xf32>
    %40 = arith.addf %32, %39 : vector<2x128xf32>
    %41 = vector.broadcast %11 : f32 to vector<2x128xf32>
    %42 = arith.mulf %41, %37 : vector<2x128xf32>
    %43 = arith.addf %35, %42 : vector<2x128xf32>
    %c0_21 = arith.constant 0 : index
    %c3_22 = arith.constant 3 : index
    %c0_23 = arith.constant 0 : index
    %c0_24 = arith.constant 0 : index
    %44 = vector.load %arg2[%c0_21, %c3_22, %c0_23, %c0_24] : memref<1x4x2x128xf32, #tpu.memory_space<vmem>>, vector<1x1x2x128xf32>
    %45 = vector.shape_cast %44 : vector<1x1x2x128xf32> to vector<2x128xf32>
    %46 = vector.broadcast %13 : f32 to vector<2x128xf32>
    %47 = arith.mulf %46, %45 : vector<2x128xf32>
    %48 = arith.addf %40, %47 : vector<2x128xf32>
    %49 = vector.broadcast %15 : f32 to vector<2x128xf32>
    %50 = arith.mulf %49, %45 : vector<2x128xf32>
    %51 = arith.addf %43, %50 : vector<2x128xf32>
    %c0_25 = arith.constant 0 : index
    %c0_26 = arith.constant 0 : index
    %c0_27 = arith.constant 0 : index
    %c0_28 = arith.constant 0 : index
    %52 = vector.load %arg5[%c0_25, %c0_26, %c0_27, %c0_28] : memref<1x2x2x128xf32, #tpu.memory_space<vmem>>, vector<1x1x2x128xf32>
    %53 = vector.shape_cast %52 : vector<1x1x2x128xf32> to vector<2x128xf32>
    %54 = vector.shape_cast %48 : vector<2x128xf32> to vector<1x1x2x128xf32>
    tpu.vector_store %arg5[%c0_25, %c0_26, %c0_27, %c0_28], %54 {strides = array<i32>} : memref<1x2x2x128xf32, #tpu.memory_space<vmem>>, vector<1x1x2x128xf32>,
    %c0_29 = arith.constant 0 : index
    %c1_30 = arith.constant 1 : index
    %c0_31 = arith.constant 0 : index
    %c0_32 = arith.constant 0 : index
    %55 = vector.load %arg5[%c0_29, %c1_30, %c0_31, %c0_32] : memref<1x2x2x128xf32, #tpu.memory_space<vmem>>, vector<1x1x2x128xf32>
    %56 = vector.shape_cast %55 : vector<1x1x2x128xf32> to vector<2x128xf32>
    %57 = vector.shape_cast %51 : vector<2x128xf32> to vector<1x1x2x128xf32>
    tpu.vector_store %arg5[%c0_29, %c1_30, %c0_31, %c0_32], %57 {strides = array<i32>} : memref<1x2x2x128xf32, #tpu.memory_space<vmem>>, vector<1x1x2x128xf32>,
    return
  }
  func.func @transform_0(%arg0: i32, %arg1: i32) -> (i32, i32, i32, i32) {
    %c0_i32 = arith.constant 0 : i32
    %c0_i32_0 = arith.constant 0 : i32
    %c0_i32_1 = arith.constant 0 : i32
    return %arg0, %c0_i32, %arg1, %c0_i32_0 : i32, i32, i32, i32
  }
  func.func @transform_1(%arg0: i32, %arg1: i32) -> i32 {
    %c0_i32 = arith.constant 0 : i32
    %c0_i32_0 = arith.constant 0 : i32
    return %c0_i32 : i32
  }
  func.func @transform_2(%arg0: i32, %arg1: i32) -> i32 {
    %c0_i32 = arith.constant 0 : i32
    %c0_i32_0 = arith.constant 0 : i32
    return %c0_i32 : i32
  }
  func.func @transform_3(%arg0: i32, %arg1: i32) -> (i32, i32, i32, i32) {
    %c0_i32 = arith.constant 0 : i32
    %c0_i32_0 = arith.constant 0 : i32
    %c0_i32_1 = arith.constant 0 : i32
    return %arg0, %c0_i32, %arg1, %c0_i32_0 : i32, i32, i32, i32
  }
}

</mosaic_0001>

<bundles_post_ra>
// kernel: tpu_custom_call.1
= control target key start
LH: loop header
LB: loop body
LE: loop exit
PB: predicated region body
PF: predicated region fallthrough
CT: control target
= control target key end

     0   :  { %8 = vsyncpa [#allocation3], 0  ;;  %s928_s0 = inlined_call_operand.hbm [shape: f32[2,4,2,128], index: 0, kind: input, shape index: {}]   ;;  %s929_s1 = inlined_call_operand.vmem [shape: f32[8], index: 1, kind: input, shape index: {}]   ;;  %s930_s2 = inlined_call_operand.vmem [shape: f32[2], index: 2, kind: input, shape index: {}]   ;;  %s931_s3 = inlined_call_operand.hbm [shape: f32[2,2,2,128], index: 3, kind: output, shape index: {}]  }
   0x1   :  { %10 = vsyncpa [#allocation3 + $0x1], 0 }
   0x2   :  { %11 = vsyncpa [#allocation5], 0 }
   0x3   :  { %12 = vsyncpa [#allocation8], 0 }
   0x4   :  { %13 = vsyncpa [#allocation4], 0 }
   0x5   :  { %15 = vsyncpa [#allocation4 + $0x1], 0  ;;  %s709_s12 = smov 0   ;;  %s711_s13 = smov 0  }
   0x6   :  { %s713_s14 = smov 0   ;;  %s715_s15 = smov 0  }
   0x7   :  { %s717_s16 = smov 0   ;;  %s719_s17 = smov 0  }
   0x8 LB: > { %s409_s18 = sadd.s32 4294967295, %s679_s17   ;;  %s410_s19 = sadd.s32 4294967294, %s679_s17   ;;  %s679_s17 = sphi %s719_s17, %s21_s17   ;;  %s675_s16 = sphi %s717_s16, %s957_s16   ;;  %s671_s15 = sphi %s715_s15, %s956_s15   ;;  %s667_s14 = sphi %s713_s14, %s955_s14   ;;  %s663_s13 = sphi %s711_s13, %s954_s13   ;;  %s659_s12 = sphi %s709_s12, %s953_s12  }
   0x9   : > { %s42_s20 = sadd.s32 1, %s667_s14  ;;  %p49_p0 = scmp.ne.s32.totalorder %s667_s14, %s663_s13 }
   0xa   : > { %p50_p1 = scmp.eq.s32.totalorder %s679_s17, 0  ;;  %p55_p2 = scmp.ne.s32.totalorder %s663_s13, %s659_s12 }
   0xb   : > { %p747_p3 = scmp.eq.s32.totalorder %s409_s18, 0  ;;  %p123_p4 = scmp.eq.s32.totalorder %s409_s18, 1 }
   0xc   : > { %p751_p5 = por %p50_p1, %p49_p0  ;;  %p129_p6 = scmp.eq.s32.totalorder %s410_s19, 1 }
   0xd   : > { %s938_s21 = scalar_select %p747_p3, 1, 0 }
   0xe   : > { %p757_p7 = por %p747_p3, %p55_p2  ;;  %p761_p8 = por %p123_p4, %p49_p0 }
   0xf   : > { %p765_p9 = por %p129_p6, %p55_p2  ;;  %p411_p10 = scmp.ge.s32.totalorder %s679_s17, 1 }
  0x10   : > { %s940_s23 = scalar_select %p757_p7, 1, 0 }
  0x11   : > { %s941_s24 = scalar_select %p761_p8, 1, 0 }
  0x12   : > { %s942_s25 = scalar_select %p765_p9, 1, 0 }
  0x13   : > { %p136_p11 = scmp.lt.s32.totalorder %s679_s17, 3  ;;  %s149_s28 = sshll.u32 %s929_s1, 4  ;;  %s150_s28 = int_to_ptr.vmem [resolvable:$true] %s149_s28 }
  0x14   : > { %p471_p0 = scmp.lt.s32.totalorder %s679_s17, 2  ;;  %s160_s5 = sshll.u32 %s930_s2, 4  ;;  %s161_s5 = int_to_ptr.vmem [resolvable:$true] %s160_s5 }
  0x15   : > { %p774_p12 = pnand %p411_p10, %p136_p11  ;;  %s529_s8 = scalar_lea.vmem %s150_s28, 16 }
  0x16   : > { %p787_p2 = pnand %p471_p0, %p751_p5  ;;  %p530_p6 = scmp.ne.s32.totalorder %s150_s28, %s529_s8 }
  0x17   : > { %s943_s29 = scalar_select %p774_p12, 1, 0 }
  0x18   : > { %p454_p1 = pneg %p774_p12  ;;  %p537_p9 = scmp.lt.s32.totalorder %s150_s28, %s150_s28 }
  0x19   : > { %s944_s6 = scalar_select %p787_p2, 1, 0 }
  0x1a   : > { %p793_p4 = pnand %p454_p1, %p747_p3  ;;  %p538_p8 = scmp.lt.s32.totalorder %s529_s8, %s529_s8 }
  0x1c   : > { %p531_p10 = pneg %p793_p4  ;;  %p539_p7 = por %p538_p8, %p537_p9 }
  0x1e   : > { %p532_p11 = pnand %p531_p10, %p530_p6 }
  0x20   : > { %p533_p13 = pneg %p532_p11 }
  0x22   : > { %p540_p5 = pnand %p539_p7, %p533_p13 }
  0x24   : > { %543 = shalt.err (!%p540_p5)
}
  0x25   : > { %s681_s9 = smov [#allocation6]   ;;  %s544_s10 = scalar_lea.vmem %s161_s5, 16 }
  0x26   : > { %457 = dma.vmem_to_smem (!%p793_p4), %s150_s28, 16, %s681_s9, [#allocation5]  }
  0x27   : > { %p545_p0 = scmp.ne.s32.totalorder %s161_s5, %s544_s10  ;;  %p552_p12 = scmp.lt.s32.totalorder %s161_s5, %s161_s5 }
  0x28   : > { %p553_p2 = scmp.lt.s32.totalorder %s544_s10, %s544_s10 }
  0x29   : > { %p547_p1 = pnand %p545_p0, %p531_p10 }
  0x2a   : > { %p554_p6 = por %p553_p2, %p552_p12 }
  0x2b   : > { %p548_p3 = pneg %p547_p1 }
  0x2d   : > { %p555_p11 = pnand %p554_p6, %p548_p3 }
  0x2f   : > { %558 = shalt.err (!%p555_p11)
}
  0x30   : > { %s682_s11 = smov [#allocation7]   ;;  %s33_s18 = sadd.s32 1, %s675_s16 }
  0x31   : > { %460 = dma.vmem_to_smem (!%p793_p4), %s161_s5, 16, %s682_s11, [#allocation8]  }
  0x32   : > { %s171_s19 = sand.u32 1, %s667_s14   ;;  %p35_p7 = scmp.ge.s32.totalorder %s33_s18, 2 }
  0x33   : > { %s415_s22 = sshll.u32 %s171_s19, 3  ;;  %s440_s26 = sshll.u32 %s675_s16, 7 }
  0x34   : > { %s959_s18 = smov (%p35_p7, %s33_s18), 0  ;;  %s811_s30 = scalar_lea.hbm %s928_s0, %s440_s26 }
  0x35   : > { %s37_s4 = ssub.s32 %s675_s16, %s959_s18  ;;  %s175_s5 = scalar_lea.vmem [#allocation2], %s415_s22 }
  0x36   : > { %s183_s7 = sshll.u32 %s175_s5, 4  ;;  %p40_p3 = scmp.eq.s32.totalorder %s37_s4, 0  ;;  %s815_s7 = int_to_ptr.vmem [resolvable:$true] %s183_s7 }
  0x37   : > { %s822_s9 = scalar_lea.sflag [#allocation3], %s171_s19  ;;  %s559_s10 = scalar_lea.hbm %s811_s30, 128 }
  0x38   : > { %s820_s8 = scalar_select %p40_p3, %s667_s14, %s42_s20  }
  0x39   : > { %p560_p8 = scmp.ne.s32.totalorder %s811_s30, %s559_s10  ;;  %p946_p9 = scmp.ne.s32.totalorder %s944_s6, 0 }
  0x3a   : > { %s564_s22 = scalar_lea.hbm %s928_s0, 256  ;;  %p565_p4 = scmp.lt.u32.totalorder %s811_s30, %s928_s0 }
  0x3b   : > { %p561_p12 = pneg %p946_p9  ;;  %p566_p10 = scmp.lt.u32.totalorder %s564_s22, %s559_s10 }
  0x3c   : > { %p568_p0 = scmp.lt.u32.totalorder %s559_s10, %s811_s30 }
  0x3d   : > { %p562_p13 = pnand %p561_p12, %p560_p8  ;;  %p567_p5 = por %p566_p10, %p565_p4 }
  0x3f   : > { %p563_p2 = pneg %p562_p13  ;;  %p569_p1 = por %p568_p0, %p567_p5 }
  0x41   : > { %p570_p6 = pnand %p569_p1, %p563_p2 }
  0x43   : > { %573 = shalt.err (!%p570_p6)
}
  0x44   : > { %s574_s20 = scalar_lea.vmem %s815_s7, 128  ;;  %s683_s19 = smov [#allocation2]  }
  0x45   : > { %p575_p11 = scmp.ne.s32.totalorder %s815_s7, %s574_s20  ;;  %s579_s4 = sshll.u32 %s683_s19, 4  ;;  %s580_s4 = int_to_ptr.vmem [resolvable:$false] %s579_s4 }
  0x46   : > { %s581_s5 = scalar_lea.vmem %s580_s4, 256  ;;  %p582_p8 = scmp.lt.s32.totalorder %s815_s7, %s580_s4 }
  0x47   : > { %p577_p7 = pnand %p575_p11, %p561_p12  ;;  %p583_p13 = scmp.lt.s32.totalorder %s581_s5, %s574_s20 }
  0x49   : > { %p578_p3 = pneg %p577_p7  ;;  %p584_p4 = por %p583_p13, %p582_p8 }
  0x4b   : > { %p585_p10 = pnand %p584_p4, %p578_p3 }
  0x4d   : > { %588 = shalt.err (!%p585_p10)
}
  0x4e   : > { %s684_s10 = smov 32   ;;  %s685_s11 = smov 2  }
  0x4f   : > { %464 = dma.hbm_to_vmem [thread:$0]  (!%p946_p9), %s811_s30, 128, %s815_s7, %s822_s9, %s684_s10, %s684_s10, %s685_s11  }
  0x50   : > { %p947_p12 = scmp.ne.s32.totalorder %s943_s29, 0 }
  0x51   : > { %s853_s26 = sand.u32 (!%p947_p12), 1, %s663_s13   ;;  %p948_p2 = scmp.ne.s32.totalorder (!%p947_p12), %s940_s23, 0 }
  0x52   : > { %195 = sbr.rel (%p947_p12) target bundleno = 131 (0x83), region = 32  ;;  %s419_s22 = sshll.u32 (!%p947_p12), %s853_s26, 3 }
  0x53   : > { %s198_s27 = scalar_lea.sflag (!%p947_p12), [#allocation3], %s853_s26  ;;  %s201_s28 = scalar_lea.vmem (!%p947_p12), [#allocation2], %s419_s22 }
  0x59   : > { %642 = dma.done.wait (%p948_p2), %s198_s27, 128  }
  0x5a   : > { %644 = vsyncadd (%p948_p2), %s198_s27, 4294967168  ;;  %p949_p5 = scmp.ne.s32.totalorder %s938_s21, 0 }
  0x5c   : > { %646 = dma.done.wait (%p949_p5), [#allocation5], 16  }
  0x5d   : > { %648 = vsyncadd (%p949_p5), [#allocation5], 4294967280 }
  0x5e   : > { %650 = dma.done.wait (%p949_p5), [#allocation8], 16  }
  0x5f   : > { %652 = vsyncadd (%p949_p5), [#allocation8], 4294967280 }
  0x60   : > { %214 = sfence }
  0x61   : > { %s233_s29 = sld [smem:[#allocation6]]  ;;  %s424_s6 = sld [smem:[#allocation6 + $0x2]]  ;;  %v251_v0 = vld [vmem:[%s201_s28] sm:$0x3]  ;;  %v431_v3 = vld [vmem:[%s201_s28 + $0x2] sm:$0x3] }
  0x62   : > { %s426_s30 = sld [smem:[#allocation6 + $0x4]]  ;;  %s428_s7 = sld [smem:[#allocation6 + $0x6]]  ;;  %v432_v4 = vld [vmem:[%s201_s28 + $0x4] sm:$0x3]  ;;  %v433_v6 = vld [vmem:[%s201_s28 + $0x6] sm:$0x3] }
  0x63   : > { %s249_s23 = sld [smem:[#allocation7]]  ;;  %s423_s9 = sld [smem:[#allocation6 + $0x1]] }
  0x64   : > { %s425_s20 = sld [smem:[#allocation6 + $0x3]]  ;;  %s427_s19 = sld [smem:[#allocation6 + $0x5]] }
  0x65   : > { %s869_s4 = sld [smem:[#allocation6 + $0x7]]  ;;  %s430_s5 = sld [smem:[#allocation7 + $0x1]] }
  0x66   : > { %s422_s21 = sshll.u32 %s853_s26, 2  ;;  %s441_s28 = sshll.u32 %s671_s15, 6 }
  0x67   : > { %v252_v1 = vstv %s233_s29  ;;  %s238_s10 = sadd.f32 1.0, %s424_s6  ;;  %s232_s22 = scalar_lea.vmem [#allocation9], %s422_s21 }
  0x68   : > { %v253_v2 = vmul.f32 %v252_v1, %v251_v0  ;;  %v270_v5 = vstv %s426_s30  ;;  %v278_v7 = vstv %s428_s7  ;;  %s302_s27 = sshll.u32 %s232_s22, 4  ;;  %s879_s30 = scalar_lea.hbm %s931_s3, %s441_s28  ;;  %s874_s27 = int_to_ptr.vmem [resolvable:$true] %s302_s27 }
  0x69   : > { %v254_v8 = vstv %s249_s23  ;;  %v262_v9 = vstv %s238_s10  ;;  %v271_v12 = vmul.f32 %v432_v4, %v270_v5  ;;  %v256_v13 = vstv %s423_s9  ;;  %s288_s7 = scalar_lea.sflag [#allocation4], %s853_s26  ;;  %s589_s23 = scalar_lea.vmem %s874_s27, 64 }
  0x6a   : > { %v255_v10 = vadd.f32 %v254_v8, %v253_v2  ;;  %v263_v11 = vmul.f32 %v431_v3, %v262_v9  ;;  %v279_v14 = vmul.f32 %v433_v6, %v278_v7  ;;  %s244_s11 = sadd.f32 1.0, %s427_s19  ;;  %v257_v15 = vmul.f32 %v256_v13, %v251_v0  ;;  %p590_p9 = scmp.ne.s32.totalorder %s874_s27, %s589_s23 }
  0x6b   : > { %v265_v16 = vstv %s425_s20  ;;  %v258_v18 = vstv %s430_s5  ;;  %v281_v20 = vstv %s869_s4  ;;  %p950_p0 = scmp.ne.s32.totalorder %s941_s24, 0  ;;  %s686_s15 = smov [#allocation9]  }
  0x6c   : > { %v264_v17 = vadd.f32 %v263_v11, %v255_v10  ;;  %v266_v19 = vmul.f32 %v431_v3, %v265_v16  ;;  %v259_v21 = vadd.f32 %v258_v18, %v257_v15  ;;  %v273_v22 = vstv %s244_s11  ;;  %s593_s9 = sshll.u32 %s686_s15, 4  ;;  %s594_s9 = int_to_ptr.vmem [resolvable:$false] %s593_s9 }
  0x6d   : > { %v274_v24 = vmul.f32 %v432_v4, %v273_v22  ;;  %v282_v26 = vmul.f32 %v433_v6, %v281_v20  ;;  %p591_p1 = pnand %p590_p9, %p950_p0  ;;  %s595_s20 = scalar_lea.vmem %s594_s9, 128 }
  0x6e   : > { %v272_v23 = vadd.f32 %v271_v12, %v264_v17  ;;  %v267_v25 = vadd.f32 %v266_v19, %v259_v21  ;;  %p596_p11 = scmp.lt.s32.totalorder %s874_s27, %s594_s9  ;;  %p597_p7 = scmp.lt.s32.totalorder %s595_s20, %s589_s23 }
  0x6f   : > { %p592_p6 = pneg %p591_p1 }
  0x70   : > { %v280_v27 = vadd.f32 %v279_v14, %v272_v23  ;;  %v275_v28 = vadd.f32 %v274_v24, %v267_v25  ;;  %p598_p3 = por %p597_p7, %p596_p11 }
  0x72   : > { %284 = vst [vmem:[%s232_s22] sm:$0x3] %v280_v27  ;;  %v283_v29 = vadd.f32 %v282_v26, %v275_v28  ;;  %p599_p8 = pnand %p598_p3, %p592_p6 }
  0x74   : > { %434 = vst [vmem:[%s232_s22 + $0x2] sm:$0x3] %v283_v29 }
  0x75   : > { %602 = shalt.err (!%p599_p8)
}
  0x76   : > { %s603_s19 = scalar_lea.hbm %s879_s30, 64  ;;  %s607_s10 = scalar_lea.hbm %s931_s3, 128 }
  0x77   : > { %p604_p13 = scmp.ne.s32.totalorder %s879_s30, %s603_s19  ;;  %p608_p12 = scmp.lt.u32.totalorder %s879_s30, %s931_s3 }
  0x78   : > { %p609_p2 = scmp.lt.u32.totalorder %s607_s10, %s603_s19  ;;  %p611_p9 = scmp.lt.u32.totalorder %s603_s19, %s879_s30 }
  0x79   : > { %p605_p4 = pnand %p604_p13, %p950_p0 }
  0x7a   : > { %p610_p5 = por %p609_p2, %p608_p12 }
  0x7b   : > { %p606_p10 = pneg %p605_p4 }
  0x7c   : > { %p612_p1 = por %p611_p9, %p610_p5 }
  0x7e   : > { %p613_p6 = pnand %p612_p1, %p606_p10 }
  0x80   : > { %616 = shalt.err (!%p613_p6)
}
  0x81   : > { %s687_s22 = smov 32   ;;  %s688_s28 = smov 2  }
  0x82   : > { %452 = dma.vmem_to_hbm [thread:$0]  (%p950_p0), %s874_s27, 64, %s879_s30, %s288_s7, %s687_s22, %s687_s22, %s688_s28  }
  0x83 PF: > { %s317_s29 = sand.u32 1, %s659_s12   ;;  %p951_p11 = scmp.ne.s32.totalorder %s942_s25, 0 }
  0x84   : > { %p952_p7 = scmp.ge.s32.totalorder %s679_s17, 2  ;;  %s318_s6 = scalar_lea.sflag [#allocation4], %s317_s29 }
  0x86   : > { %p466_p3 = pnand %p952_p7, %p951_p11 }
  0x88   : > { %654 = dma.done.wait (!%p466_p3), %s318_s6, 64  }
  0x89   : > { %656 = vsyncadd (!%p466_p3), %s318_s6, 4294967232  ;;  %s21_s17 = sadd.s32 1, %s679_s17   ;;  %s953_s12 = smov %s663_s13 }
  0x8a   : > { %p18_p8 = scmp.ge.s32.totalorder %s21_s17, 4   ;;  %s954_s13 = smov %s667_s14 }
  0x8b   : > { %s955_s14 = smov %s820_s8  ;;  %s956_s15 = smov %s675_s16 }
  0x8c   : > { %s957_s16 = smov %s959_s18  ;;  %20 = sbr.rel (!%p18_p8) target bundleno = 8 (0x8), region = 90 }
  0x93   :  { %323 = vsyncpa [#allocation3], 1 }
  0x94   :  { %325 = vsyncpa [#allocation3 + $0x1], 1 }
  0x95   :  { %326 = vsyncpa [#allocation4], 1 }
  0x96   :  { %328 = vsyncpa [#allocation4 + $0x1], 1 }
  0x97   :  { %329 = vsyncpa [#allocation5], 1 }
  0x98   :  { %331 = vsyncpa [#allocation5 + $0x1], 1 }
  0x99   :  { %332 = vsyncpa [#allocation8], 1 }

</bundles_post_ra>
